<compile_context>
chip_gen: v5e
topology: v5e:2x2
jax: 0.10.0
libtpu: 0.0.40
codegen_flags: <defaults>
</compile_context>

<pallas_src>
import functools

import jax
import jax.numpy as jnp
import numpy as np
from jax.experimental import pallas as pl
from jax.experimental.pallas import tpu as pltpu


def _round_up(v, m):
    return ((v + m - 1) // m) * m


# ------------------------------- kernel --------------------------------------

def _wavelet_kernel(K, F_in, F_out_pad, Bt, xs_ref, a_ref, th_ref, b_ref, o_ref):
    """One grid step = Bt batch elements (statically unrolled).

    Per element:
        T_0 = x, T_1 = A x, T_k = 2 A T_{k-1} - T_{k-2}    (bf16 MXU, f32 acc)
        out = [T_0..T_K | s*T_0..s*T_K] @ [Theta0_flat ; Theta1_flat] + bias
    """
    th = th_ref[...]        # [2*(K+1)*F_in, F_out_pad] bf16, resident weight
    bias = b_ref[...]       # [1, F_out_pad] f32

    for b in range(Bt):     # static unroll; each iteration is a 2-D MXU chain
        xs = xs_ref[b]                          # [N, F_in+1] f32  ([x | s])
        x = xs[:, :F_in]                        # [N, F_in]
        s = xs[:, F_in:F_in + 1]                # [N, 1]
        A = a_ref[b]                            # [N, N] bf16

        # Chebyshev recursion (K is a small static Python int); operands to
        # the MXU are bf16, carries/accumulation stay f32.
        tx = [x]
        if K >= 1:
            t_prev = x
            t_cur = jnp.dot(A, x.astype(jnp.bfloat16),
                            preferred_element_type=jnp.float32)
            tx.append(t_cur)
            for _ in range(2, K + 1):
                t_next = 2.0 * jnp.dot(A, t_cur.astype(jnp.bfloat16),
                                       preferred_element_type=jnp.float32) - t_prev
                tx.append(t_next)
                t_prev, t_cur = t_cur, t_next

        # Single fused projection: [T | s*T] @ [Theta0 ; Theta1]  (f32 accum).
        tx_cat = jnp.concatenate(tx, axis=-1)                  # [N, (K+1)*F_in]
        stacked = jnp.concatenate([tx_cat, s * tx_cat],
                                  axis=-1).astype(jnp.bfloat16)
        acc = jnp.dot(stacked, th, preferred_element_type=jnp.float32)
        o_ref[b] = (acc + bias).astype(o_ref.dtype)            # full-lane vst


# ------------------------------- wrapper --------------------------------------

def _vmem_need_bytes(Bt, N, F_in, F_out_pad, K):
    """Estimate of real VMEM use: lane/sublane-padded double-buffered blocks,
    resident weight, and compiler-managed temporaries inside the body."""
    C = 2 * (K + 1) * F_in
    n8, n16, n128 = _round_up(N, 8), _round_up(N, 16), _round_up(N, 128)
    xs_blk = n8 * _round_up(F_in + 1, 128) * 4        # f32
    a_blk = n16 * n128 * 2                            # bf16
    out_blk = n16 * F_out_pad * 2                     # bf16
    blocks = 2 * Bt * (xs_blk + a_blk + out_blk)      # double-buffered
    theta = 2 * _round_up(C, 16) * F_out_pad * 2      # assume 2 buffers
    bias_b = 2 * 8 * F_out_pad * 4
    # temporaries per unrolled element: T_k chain, tx_cat / s*tx_cat, stacked
    # bf16 operand, f32 matmul result; x2 scheduling slack.
    temps = 2 * n8 * ((K + 3) * 128 * 4
                      + 2 * _round_up((K + 1) * F_in, 128) * 4
                      + _round_up(C, 128) * 2
                      + F_out_pad * 4)
    return blocks + theta + bias_b + temps


def _pick_batch_block(B, N, F_in, F_out_pad, K, budget):
    # Keep at least 2 grid steps when B >= 2 so both v7x TensorCores are fed,
    # but block multiple small graphs per step to amortize grid overhead.
    cap = max(1, min(8, B // 2)) if B >= 2 else 1
    bt = 1
    for cand in range(1, cap + 1):
        if B % cand == 0 and _vmem_need_bytes(cand, N, F_in, F_out_pad, K) <= budget:
            bt = cand
    return bt


def adaptive_graph_wavelet_conv(x, adj, s_local, theta0, theta1, bias, *, K):
    """x:[B,N,F_in] f32, adj:[B,N,N], s_local:[B,N] -> [B,N,F_out] (x.dtype)."""
    B, N, F_in = x.shape
    F_out = theta0.shape[-1]
    F_out_pad = _round_up(max(F_out, 1), 128)
    C = 2 * (K + 1) * F_in

    # Fused lane-dense weight: rows = [Theta0 (k,f) ; Theta1 (k,f)], bf16.
    th_flat = jnp.concatenate(
        [theta0.astype(jnp.float32).reshape((K + 1) * F_in, F_out),
         theta1.astype(jnp.float32).reshape((K + 1) * F_in, F_out)], axis=0)
    theta_cat = jnp.zeros((C, F_out_pad), jnp.float32).at[:, :F_out].set(
        th_flat).astype(jnp.bfloat16)

    bias_p = jnp.zeros((1, F_out_pad), jnp.float32).at[0, :F_out].set(
        bias.astype(jnp.float32))

    # x with s_local appended as the last feature column.
    xs = jnp.concatenate(
        [x.astype(jnp.float32), s_local.astype(jnp.float32)[..., None]], axis=-1)
    adj_bf16 = adj.astype(jnp.bfloat16)

    # Generation-aware VMEM budget.
    try:
        vmem_cap = int(pltpu.get_tpu_info().vmem_capacity_bytes)
    except Exception:
        vmem_cap = 64 * 1024 * 1024            # conservative (v7x per-core)
    budget = vmem_cap - 8 * 1024 * 1024

    Bt = _pick_batch_block(B, N, F_in, F_out_pad, K, budget)
    need = _vmem_need_bytes(Bt, N, F_in, F_out_pad, K)
    vmem_limit = int(min(budget, max(2 * need, 32 * 1024 * 1024)))

    flops = B * (2 * K * N * N * F_in + 2 * N * C * F_out_pad)
    bytes_accessed = int(adj_bf16.size * 2 + xs.size * 4 + theta_cat.size * 2
                         + bias_p.size * 4 + B * N * F_out_pad * 2)

    kernel = functools.partial(_wavelet_kernel, K, F_in, F_out_pad, Bt)
    out_pad = pl.pallas_call(
        kernel,
        out_shape=jax.ShapeDtypeStruct((B, N, F_out_pad), jnp.bfloat16),
        grid=(B // Bt,),
        in_specs=[
            pl.BlockSpec((Bt, N, F_in + 1), lambda b: (b, 0, 0)),   # [x | s]
            pl.BlockSpec((Bt, N, N), lambda b: (b, 0, 0)),          # A (bf16)
            pl.BlockSpec((C, F_out_pad), lambda b: (0, 0)),         # Theta_cat
            pl.BlockSpec((1, F_out_pad), lambda b: (0, 0)),         # bias
        ],
        out_specs=pl.BlockSpec((Bt, N, F_out_pad), lambda b: (b, 0, 0)),
        compiler_params=pltpu.CompilerParams(
            dimension_semantics=("parallel",),
            vmem_limit_bytes=vmem_limit),
        cost_estimate=pl.CostEstimate(
            flops=flops, transcendentals=0, bytes_accessed=bytes_accessed),
    )(xs, adj_bf16, theta_cat, bias_p)

    return out_pad[..., :F_out].astype(x.dtype)


# ----------------------------- glue (plain JAX) -------------------------------

def densify_edges(edge_index, edge_attr, B, N):
    """Dense A[b, dst, src] from global-index COO edges [2, E], attrs [E].

    Matches the module's non-list branch: batch membership is decided by the
    source index (edges are assumed not to cross batch blocks).
    """
    src = edge_index[0]
    dst = edge_index[1]
    b = src // N
    A = jnp.zeros((B, N, N), jnp.float32)
    A = A.at[b, dst % N, src % N].add(edge_attr.astype(jnp.float32))
    return A


def xavier_uniform(key, shape, gain):
    # PyTorch fan convention for [K+1, F_in, F_out].
    fan_in = shape[1] * shape[2]
    fan_out = shape[0] * shape[2]
    bound = gain * np.sqrt(6.0 / (fan_in + fan_out))
    return jax.random.uniform(key, shape, jnp.float32, -bound, bound)


def reference_forward(x, adj, s_local, theta0, theta1, bias, K):
    """Numerics-matched reference (bf16 A / operands / Theta, f32 accumulation,
    bf16 output store) computed with plain einsums."""
    f32 = jnp.float32
    A = adj.astype(jnp.bfloat16).astype(f32)

    def mp(T):
        return jnp.einsum('bij,bjf->bif', A, T.astype(jnp.bfloat16).astype(f32))

    Tx = [x.astype(f32)]
    if K >= 1:
        t_prev, t_cur = x.astype(f32), mp(x)
        Tx.append(t_cur)
        for _ in range(2, K + 1):
            t_next = 2.0 * mp(t_cur) - t_prev
            Tx.append(t_next)
            t_prev, t_cur = t_cur, t_next
    Tx = jnp.stack(Tx, axis=0)                        # [K+1, B, N, F_in]

    s = s_local.astype(f32)[None, :, :, None]         # [1, B, N, 1]
    Txb = Tx.astype(jnp.bfloat16).astype(f32)
    sTxb = (s * Tx).astype(jnp.bfloat16).astype(f32)
    th0 = theta0.astype(jnp.bfloat16).astype(f32)
    th1 = theta1.astype(jnp.bfloat16).astype(f32)
    out = (jnp.einsum('kbnf,kfo->bno', Txb, th0)
           + jnp.einsum('kbnf,kfo->bno', sTxb, th1)
           + bias.astype(f32))
    return out.astype(jnp.bfloat16).astype(f32)


if __name__ == "__main__":
    B, N, F_in, F_out, K = 2, 16, 4, 8, 3

    key = jax.random.PRNGKey(0)
    k_x, k_s, k_t0, k_t1, k_w = jax.random.split(key, 5)

    # Deterministic parameters (synthetic Xavier init, as in reset_parameters).
    gain = float(np.sqrt(2.0))  # calculate_gain('relu')
    Theta0 = xavier_uniform(k_t0, (K + 1, F_in, F_out), gain)
    Theta1 = xavier_uniform(k_t1, (K + 1, F_in, F_out), gain * 0.1)
    bias = jnp.zeros((F_out,), jnp.float32)

    # Inputs.
    x = jax.random.normal(k_x, (B, N, F_in), jnp.float32)
    s_local = jax.random.uniform(k_s, (B, N), jnp.float32)

    # Deterministic ring graph per batch, concatenated COO [2, E] with global
    # node indices (matches the non-list branch of forward()).
    src_list, dst_list = [], []
    for b in range(B):
        for i in range(N):
            src_list += [b * N + i, b * N + i]
            dst_list += [b * N + (i + 1) % N, b * N + (i - 1) % N]
    edge_index = jnp.array([src_list, dst_list], dtype=jnp.int32)
    E = edge_index.shape[1]
    edge_attr = 0.5 + 0.5 * jax.random.uniform(k_w, (E,), jnp.float32)

    adj = densify_edges(edge_index, edge_attr, B, N)

    out = adaptive_graph_wavelet_conv(x, adj, s_local, Theta0, Theta1, bias, K=K)
    out = jax.block_until_ready(out)

    ref = reference_forward(x, adj, s_local, Theta0, Theta1, bias, K)
    np.testing.assert_allclose(np.asarray(out), np.asarray(ref),
                               rtol=1e-2, atol=1e-2)

    print("KERNEL_OK")
</pallas_src>

<mosaic_0001>
module attributes {stable_mosaic.version = 11 : i64} {
  func.func @_wavelet_kernel(%arg0: i32, %arg1: memref<1x16x5xf32, #tpu.memory_space<vmem>>, %arg2: memref<1x16x16xbf16, #tpu.memory_space<vmem>>, %arg3: memref<32x128xbf16, #tpu.memory_space<vmem>>, %arg4: memref<1x128xf32, #tpu.memory_space<vmem>>, %arg5: memref<1x16x128xbf16, #tpu.memory_space<vmem>>) attributes {dimension_semantics = [#tpu.dimension_semantics<parallel>], iteration_bounds = array<i64: 2>, scalar_prefetch = 0 : i64, scratch_operands = 0 : i64, tpu.core_type = #tpu.core_type<tc>, window_params = [{transform_indices = @transform_0, window_bounds = array<i64: 1, 16, 5>}, {transform_indices = @transform_1, window_bounds = array<i64: 1, 16, 16>}, {pipeline_mode = #tpu.pipeline_mode<synchronous>, transform_indices = @transform_2, window_bounds = array<i64: 32, 128>}, {pipeline_mode = #tpu.pipeline_mode<synchronous>, transform_indices = @transform_3, window_bounds = array<i64: 1, 128>}, {transform_indices = @transform_4, window_bounds = array<i64: 1, 16, 128>}]} {
    %c0 = arith.constant 0 : index
    %c0_0 = arith.constant 0 : index
    %0 = vector.load %arg3[%c0, %c0_0] : memref<32x128xbf16, #tpu.memory_space<vmem>>, vector<32x128xbf16>
    %c0_1 = arith.constant 0 : index
    %c0_2 = arith.constant 0 : index
    %1 = vector.load %arg4[%c0_1, %c0_2] : memref<1x128xf32, #tpu.memory_space<vmem>>, vector<1x128xf32>
    %c0_3 = arith.constant 0 : index
    %c0_4 = arith.constant 0 : index
    %c0_5 = arith.constant 0 : index
    %2 = vector.load %arg1[%c0_3, %c0_4, %c0_5] : memref<1x16x5xf32, #tpu.memory_space<vmem>>, vector<1x16x5xf32>
    %3 = vector.shape_cast %2 : vector<1x16x5xf32> to vector<16x5xf32>
    %4 = vector.extract_strided_slice %3 {offsets = [0, 0], sizes = [16, 4], strides = [1, 1]} : vector<16x5xf32> to vector<16x4xf32>
    %5 = vector.extract_strided_slice %3 {offsets = [0, 4], sizes = [16, 1], strides = [1, 1]} : vector<16x5xf32> to vector<16x1xf32>
    %c0_6 = arith.constant 0 : index
    %c0_7 = arith.constant 0 : index
    %c0_8 = arith.constant 0 : index
    %6 = vector.load %arg2[%c0_6, %c0_7, %c0_8] : memref<1x16x16xbf16, #tpu.memory_space<vmem>>, vector<1x16x16xbf16>
    %7 = vector.shape_cast %6 : vector<1x16x16xbf16> to vector<16x16xbf16>
    %8 = arith.truncf %4 : vector<16x4xf32> to vector<16x4xbf16>
    %cst = arith.constant dense<0.000000e+00> : vector<16x4xf32>
    %9 = tpu.matmul %7, %8, %cst {dimension_numbers = #tpu.dot_dimension_numbers<[1], [0], [0], [1], [0, 0, 1, 1], [], []>} : vector<16x16xbf16>, vector<16x4xbf16>, vector<16x4xf32> -> vector<16x4xf32>
    %10 = arith.truncf %9 : vector<16x4xf32> to vector<16x4xbf16>
    %cst_9 = arith.constant dense<0.000000e+00> : vector<16x4xf32>
    %11 = tpu.matmul %7, %10, %cst_9 {dimension_numbers = #tpu.dot_dimension_numbers<[1], [0], [0], [1], [0, 0, 1, 1], [], []>} : vector<16x16xbf16>, vector<16x4xbf16>, vector<16x4xf32> -> vector<16x4xf32>
    %cst_10 = arith.constant 2.000000e+00 : f32
    %12 = vector.broadcast %cst_10 : f32 to vector<16x4xf32>
    %13 = arith.mulf %12, %11 : vector<16x4xf32>
    %14 = arith.subf %13, %4 : vector<16x4xf32>
    %15 = arith.truncf %14 : vector<16x4xf32> to vector<16x4xbf16>
    %cst_11 = arith.constant dense<0.000000e+00> : vector<16x4xf32>
    %16 = tpu.matmul %7, %15, %cst_11 {dimension_numbers = #tpu.dot_dimension_numbers<[1], [0], [0], [1], [0, 0, 1, 1], [], []>} : vector<16x16xbf16>, vector<16x4xbf16>, vector<16x4xf32> -> vector<16x4xf32>
    %cst_12 = arith.constant 2.000000e+00 : f32
    %17 = vector.broadcast %cst_12 : f32 to vector<16x4xf32>
    %18 = arith.mulf %17, %16 : vector<16x4xf32>
    %19 = arith.subf %18, %9 : vector<16x4xf32>
    %20 = tpu.concatenate %4, %9, %14, %19 in 1 : vector<16x4xf32>, vector<16x4xf32>, vector<16x4xf32>, vector<16x4xf32> -> vector<16x16xf32>
    %21 = vector.broadcast %5 : vector<16x1xf32> to vector<16x16xf32>
    %22 = arith.mulf %21, %20 : vector<16x16xf32>
    %23 = tpu.concatenate %20, %22 in 1 : vector<16x16xf32>, vector<16x16xf32> -> vector<16x32xf32>
    %24 = arith.truncf %23 : vector<16x32xf32> to vector<16x32xbf16>
    %cst_13 = arith.constant dense<0.000000e+00> : vector<16x128xf32>
    %25 = tpu.matmul %24, %0, %cst_13 {dimension_numbers = #tpu.dot_dimension_numbers<[1], [0], [0], [1], [0, 0, 1, 1], [], []>} : vector<16x32xbf16>, vector<32x128xbf16>, vector<16x128xf32> -> vector<16x128xf32>
    %26 = vector.broadcast %1 : vector<1x128xf32> to vector<16x128xf32>
    %27 = arith.addf %25, %26 : vector<16x128xf32>
    %28 = arith.truncf %27 : vector<16x128xf32> to vector<16x128xbf16>
    %c0_14 = arith.constant 0 : index
    %c0_15 = arith.constant 0 : index
    %c0_16 = arith.constant 0 : index
    %29 = vector.load %arg5[%c0_14, %c0_15, %c0_16] : memref<1x16x128xbf16, #tpu.memory_space<vmem>>, vector<1x16x128xbf16>
    %30 = vector.shape_cast %29 : vector<1x16x128xbf16> to vector<16x128xbf16>
    %31 = vector.shape_cast %28 : vector<16x128xbf16> to vector<1x16x128xbf16>
    tpu.vector_store %arg5[%c0_14, %c0_15, %c0_16], %31 {strides = array<i32>} : memref<1x16x128xbf16, #tpu.memory_space<vmem>>, vector<1x16x128xbf16>,
    return
  }
  func.func @transform_0(%arg0: i32) -> (i32, i32, i32) {
    %c0_i32 = arith.constant 0 : i32
    %c0_i32_0 = arith.constant 0 : i32
    %c0_i32_1 = arith.constant 0 : i32
    return %arg0, %c0_i32, %c0_i32_0 : i32, i32, i32
  }
  func.func @transform_1(%arg0: i32) -> (i32, i32, i32) {
    %c0_i32 = arith.constant 0 : i32
    %c0_i32_0 = arith.constant 0 : i32
    %c0_i32_1 = arith.constant 0 : i32
    return %arg0, %c0_i32, %c0_i32_0 : i32, i32, i32
  }
  func.func @transform_2(%arg0: i32) -> (i32, i32) {
    %c0_i32 = arith.constant 0 : i32
    %c0_i32_0 = arith.constant 0 : i32
    %c0_i32_1 = arith.constant 0 : i32
    return %c0_i32, %c0_i32_0 : i32, i32
  }
  func.func @transform_3(%arg0: i32) -> (i32, i32) {
    %c0_i32 = arith.constant 0 : i32
    %c0_i32_0 = arith.constant 0 : i32
    %c0_i32_1 = arith.constant 0 : i32
    return %c0_i32, %c0_i32_0 : i32, i32
  }
  func.func @transform_4(%arg0: i32) -> (i32, i32, i32) {
    %c0_i32 = arith.constant 0 : i32
    %c0_i32_0 = arith.constant 0 : i32
    %c0_i32_1 = arith.constant 0 : i32
    return %arg0, %c0_i32, %c0_i32_0 : i32, i32, i32
  }
}

</mosaic_0001>

<bundles_post_ra>
// kernel: tpu_custom_call.1
= control target key start
LH: loop header
LB: loop body
LE: loop exit
PB: predicated region body
PF: predicated region fallthrough
CT: control target
= control target key end

     0   :  { %9 = vsyncpa [#allocation3], 0  ;;  %s765_s0 = inlined_call_operand.vmem [shape: f32[2,16,5], index: 0, kind: input, shape index: {}]   ;;  %s766_s1 = inlined_call_operand.vmem [shape: bf16[2,16,16], index: 1, kind: input, shape index: {}]   ;;  %s767_s2 = inlined_call_operand.vmem [shape: bf16[32,128], index: 2, kind: input, shape index: {}]   ;;  %s768_s3 = inlined_call_operand.vmem [shape: f32[1,128], index: 3, kind: input, shape index: {}]   ;;  %s769_s4 = inlined_call_operand.hbm [shape: bf16[2,16,128], index: 4, kind: output, shape index: {}]  }
   0x1   :  { %11 = vsyncpa [#allocation3 + $0x1], 0  ;;  %s660_s15 = smov 0   ;;  %s662_s16 = smov 0  }
   0x2   :  { %s664_s17 = smov 0   ;;  %s666_s18 = smov 0  }
   0x3 LB: > { %s681_s19 = sadd.s32 4294967295, %s627_s18   ;;  %s471_s20 = sadd.s32 4294967294, %s627_s18   ;;  %s627_s18 = sphi %s666_s18, %s775_s18   ;;  %s623_s17 = sphi %s664_s17, %s774_s17   ;;  %s619_s16 = sphi %s662_s16, %s773_s16   ;;  %s615_s15 = sphi %s660_s15, %s772_s15  }
   0x4   : > { %s685_s21 = sadd.s32 1, %s627_s18   ;;  %s118_s22 = sadd.s32 1, %s623_s17 }
   0x5   : > { %s115_s23 = ssub.s32 %s627_s18, %s685_s21  ;;  %p128_p0 = scmp.ne.s32.totalorder %s623_s17, %s619_s16 }
   0x6   : > { %p116_p1 = scmp.eq.s32.totalorder %s115_s23, 0  ;;  %p129_p2 = scmp.eq.s32.totalorder %s681_s19, 1 }
   0x7   : > { %p134_p3 = scmp.ne.s32.totalorder %s619_s16, %s615_s15  ;;  %p135_p4 = scmp.eq.s32.totalorder %s471_s20, 1 }
   0x8   : > { %s696_s24 = scalar_select %p116_p1, %s623_s17, %s118_s22  }
   0x9   : > { %p698_p5 = por %p129_p2, %p128_p0  ;;  %p702_p6 = por %p135_p4, %p134_p3 }
   0xa   : > { %p474_p7 = scmp.ge.s32.totalorder %s627_s18, 1  ;;  %p175_p8 = scmp.lt.s32.totalorder %s627_s18, 3 }
   0xc   : > { %p176_p9 = pnand %p474_p7, %p175_p8 }
   0xd   : > { %p206_p10 = scmp.lt.s32.totalorder (!%p176_p9), %s681_s19, 1  ;;  %s629_s10 = smov (!%p176_p9), 4  }
   0xe   : > { %179 = sbr.rel (%p176_p9) target bundleno = 795 (0x31b), region = 36  ;;  %s630_s11 = smov (!%p176_p9), 8  }
   0xf   : > { %s632_s12 = smov (!%p176_p9), 12   ;;  %s633_s20 = smov (!%p176_p9), 16  }
  0x10   : > { %s585_s23 = scalar_lea.hbm (!%p176_p9), %s769_s4, 16 }
  0x13   : > { %s207_s27 = scalar_select %p206_p10, %s681_s19, 1  ;;  %vm232_vm0 = vcmask 130048   ;;  %v631_v14 = vmov 4   ;;  %v504_v21 = vld [vmem:[%s767_s2 + $0x8] sm:$0xff]  ;;  %vm312_vm1 = vcmask 31744   ;;  %vm315_vm2 = vcmask 64512  }
  0x14   : > { %557 = vset.pattern.permute.xlu0 %v631_v14  ;;  %558 = vset.pattern.permute.xlu1 %v631_v14  ;;  %vm318_vm3 = vcmask 97280   ;;  %v503_v39 = vld [vmem:[%s767_s2] sm:$0xff]  ;;  %vm359_vm4 = vcmask 261120  }
  0x15   : > { %s501_s28 = sshll.u32 %s207_s27, 4  ;;  %s502_s29 = sshll.u32 %s207_s27, 3  ;;  %369 = vmatpush.bf16.msra.mxu3 %v504_v21  ;;  %v564_v47 = vld [vmem:[%s768_s3] ss:$0 sm:$0xff] }
  0x16   : > { %s210_s6 = scalar_lea.vmem %s765_s0, %s501_s28  ;;  %s215_s9 = scalar_lea.vmem %s766_s1, %s502_s29 }
  0x17   : > { %v222_v0 = vld [vmem:[%s210_s6] sm:$0xff]  ;;  %v223_v1 = vld [vmem:[%s210_s6 + $0x8] sm:$0xff]  ;;  %s203_s27 = sand.u32 1, %s619_s16   ;;  %s506_s29 = sshll.u32 %s681_s19, 3 }
  0x18   : > { %v226_v2 = vpack.c.bf16 %v223_v1, %v222_v0  ;;  %v505_v3 = vld [vmem:[%s215_s9] sm:$0xff]  ;;  %s475_s28 = sshll.u32 %s203_s27, 3  ;;  %s393_s8 = scalar_lea.hbm %s769_s4, %s506_s29 }
  0x19   : > { %370 = vmatpush.bf16.msra.mxu3 %v503_v39  ;;  %s205_s9 = scalar_lea.vmem [#allocation2], %s475_s28  ;;  %s382_s19 = scalar_lea.sflag [#allocation3], %s203_s27 }
  0x1a   : > { %243 = vmatpush.bf16.msra.mxu0 %v226_v2 }
  0x1d   : > { %484 = vmatmul.msk.bf16.vlgmr.msra.gmra.mxu0 %vm232_vm0, %v505_v3 }
  0x9a   : > { %v245_v4 = vpop.f32.mrf.mxu0 }
  0x9b   : > { %290 = vrot.lane.b32.xlu0 %v245_v4, %s629_s10 }
  0xa2   : > { %v247_v5 = vpop.f32.mrf.mxu0 }
  0xa3   : > { %292 = vrot.lane.b32.xlu0 %v247_v5, %s629_s10  ;;  %v250_v6 = vpack.c.bf16 %v247_v5, %v245_v4 }
  0xa5   : > { %258 = vmatpush.bf16.msra.mxu1 %v250_v6 }
  0xa8   : > { %485 = vmatmul.msk.bf16.vlgmr.msra.gmra.mxu1 %vm232_vm0, %v505_v3 }
  0xab   : > { %323 = vperm.xlu0 %557, %v222_v0  }
 0x10d   : > { %v291_v22 = vpop.permute.xlu0 %290 }
 0x10e   : > { %v313_v27 = vsel %vm312_vm1, %v222_v0, %v291_v22 }
 0x115   : > { %v293_v24 = vpop.permute.xlu0 %292 }
 0x116   : > { %v314_v29 = vsel %vm312_vm1, %v223_v1, %v293_v24 }
 0x11d   : > { %v324_v30 = vpop.permute.xlu0 %323 }
 0x125   : > { %v260_v7 = vpop.f32.mrf.mxu1 }
 0x126   : > { %v265_v8 = vmul.f32 2.0, %v260_v7 }
 0x128   : > { %v267_v9 = vsub.f32 %v265_v8, %v222_v0 }
 0x12a   : > { %298 = vrot.lane.b32.xlu1 %v267_v9, %s630_s11 }
 0x12d   : > { %v262_v10 = vpop.f32.mrf.mxu1 }
 0x12e   : > { %v266_v11 = vmul.f32 2.0, %v262_v10 }
 0x130   : > { %v268_v12 = vsub.f32 %v266_v11, %v223_v1 }
 0x132   : > { %300 = vrot.lane.b32.xlu1 %v268_v12, %s630_s11  ;;  %v269_v13 = vpack.c.bf16 %v268_v12, %v267_v9  ;;  %s394_s11 = sshll.u32 %s205_s9, 4  ;;  %s395_s11 = int_to_ptr.vmem [resolvable:$true] %s394_s11 }
 0x134   : > { %277 = vmatpush.bf16.msra.mxu2 %v269_v13 }
 0x137   : > { %486 = vmatmul.msk.bf16.vlgmr.msra.gmra.mxu2 %vm232_vm0, %v505_v3 }
 0x13a   : > { %328 = vperm.xlu1 %558, %v223_v1  }
 0x19c   : > { %v299_v23 = vpop.permute.xlu1 %298 }
 0x19d   : > { %v316_v28 = vsel %vm315_vm2, %v313_v27, %v299_v23 }
 0x1a4   : > { %v301_v25 = vpop.permute.xlu1 %300 }
 0x1a5   : > { %v317_v33 = vsel %vm315_vm2, %v314_v29, %v301_v25 }
 0x1ac   : > { %v329_v32 = vpop.permute.xlu1 %328 }
 0x1ba   : > { %v279_v15 = vpop.f32.mrf.mxu2 }
 0x1bb   : > { %v284_v16 = vmul.f32 2.0, %v279_v15 }
 0x1bd   : > { %v286_v17 = vsub.f32 %v284_v16, %v245_v4 }
 0x1bf   : > { %306 = vrot.lane.b32.xlu2 %v286_v17, %s632_s12 }
 0x1c2   : > { %v281_v18 = vpop.f32.mrf.mxu2 }
 0x1c3   : > { %v285_v19 = vmul.f32 2.0, %v281_v18 }
 0x1c5   : > { %v287_v20 = vsub.f32 %v285_v19, %v247_v5 }
 0x1c7   : > { %308 = vrot.lane.b32.xlu2 %v287_v20, %s632_s12  ;;  %s396_s12 = sshll.u32 %s393_s8, 4  ;;  %s397_s12 = int_to_ptr.hbm [resolvable:$true] %s396_s12 }
 0x1c8   : > { %s579_s13 = sshra.s32 %s397_s12, 4  ;;  %s580_s13 = int_to_ptr.hbm [resolvable:$true] %s579_s13 }
 0x1c9   : > { %s581_s14 = scalar_lea.hbm %s580_s13, 8  ;;  %p586_p0 = scmp.lt.s32.totalorder %s580_s13, %s769_s4 }
 0x1ca   : > { %p582_p11 = scmp.ne.s32.totalorder %s580_s13, %s581_s14  ;;  %p587_p1 = scmp.lt.s32.totalorder %s585_s23, %s581_s14 }
 0x1cc   : > { %p583_p12 = pnand %p582_p11, %p698_p5  ;;  %p588_p2 = por %p587_p1, %p586_p0 }
 0x1ce   : > { %p584_p13 = pneg %p583_p12 }
 0x1d0   : > { %p589_p3 = pnand %p588_p2, %p584_p13 }
 0x219   : > { %v307_v26 = vpop.permute.xlu2 %306 }
 0x21a   : > { %v319_v31 = vsel %vm318_vm3, %v316_v28, %v307_v26 }
 0x21b   : > { %v331_v36 = vmul.f32 %v324_v30, %v319_v31 }
 0x221   : > { %v309_v34 = vpop.permute.xlu2 %308 }
 0x222   : > { %v320_v35 = vsel %vm318_vm3, %v317_v33, %v309_v34 }
 0x223   : > { %v332_v37 = vmul.f32 %v329_v32, %v320_v35 }
 0x225   : > { %v559_v38 = vpack.i.bf16 %v332_v37, %v331_v36 }
 0x227   : > { %560 = vrot.lane.b32.xlu2 %v559_v38, %s633_s20 }
 0x281   : > { %v561_v40 = vpop.permute.xlu2 %560 }
 0x282   : > { %v563_v41 = vunpack.i.h.bf16 %v561_v40  ;;  %v562_v42 = vunpack.i.l.bf16 %v561_v40 }
 0x284   : > { %v341_v43 = vsel %vm232_vm0, %v319_v31, %v562_v42  ;;  %v342_v44 = vsel %vm232_vm0, %v320_v35, %v563_v41 }
 0x285   : > { %v343_v45 = vpack.c.bf16 %v342_v44, %v341_v43 }
 0x287   : > { %495 = vmatmul.msk.bf16.vlgmr.msra.gmra.mxu3 %vm359_vm4, %v343_v45 }
 0x30a   : > { %v372_v46 = vpop.f32.mrf.mxu3 }
 0x30b   : > { %v373_v49 = vadd.f32 %v564_v47, %v372_v46 }
 0x312   : > { %v374_v48 = vpop.f32.mrf.mxu3 }
 0x313   : > { %v375_v50 = vadd.f32 %v564_v47, %v374_v48 }
 0x315   : > { %v510_v51 = vpack.c.bf16 %v375_v50, %v373_v49 }
 0x317   : > { %511 = vst [vmem:[%s205_s9] sm:$0xff] %v510_v51  }
 0x318   : > { %592 = shalt.err (!%p589_p3)
}
 0x319   : > { %s634_s27 = smov 64  }
 0x31a   : > { %512 = dma.vmem_to_hbm [thread:$0]  (%p698_p5), %s395_s11, 128, %s397_s12, %s382_s19, %s634_s27, %s634_s27, %s629_s10  }
 0x31b PF: > { %p518_p4 = scmp.ge.s32.totalorder %s627_s18, 2  ;;  %s411_s30 = sand.u32 1, %s615_s15  }
 0x31c   : > { %s412_s5 = scalar_lea.sflag [#allocation3], %s411_s30 }
 0x31d   : > { %p515_p7 = pnand %p518_p4, %p702_p6 }
 0x31f   : > { %p516_p8 = pneg %p515_p7 }
 0x321   : > { %610 = dma.done.wait (%p516_p8), %s412_s5, 128  }
 0x322   : > { %612 = vsyncadd (%p516_p8), %s412_s5, 4294967168  ;;  %p14_p9 = scmp.ge.s32.totalorder %s685_s21, 4   ;;  %s772_s15 = smov %s619_s16 }
 0x323   : > { %s773_s16 = smov %s623_s17  ;;  %s774_s17 = smov %s696_s24 }
 0x324   : > { %s775_s18 = smov %s685_s21  ;;  %16 = sbr.rel (!%p14_p9) target bundleno = 3 (0x3), region = 74 }
 0x329   :  { %418 = vsyncpa [#allocation3], 1 }
 0x32a   :  { %420 = vsyncpa [#allocation3 + $0x1], 1 }

</bundles_post_ra>
